<compile_context>
chip_gen: v7x
topology: tpu7x:2x2x1
jax: 0.10.0
libtpu: 0.0.40
codegen_flags: <defaults>
</compile_context>

<pallas_src>
import functools

import jax
import jax.numpy as jnp
from jax.experimental import pallas as pl
from jax.experimental.pallas import tpu as pltpu


def _make_mlp_normal_kernel(n_hidden, compute_dtype):
    """Builds a kernel for an MLP with `n_hidden` tanh hidden layers.

    Ref layout (positional):
      x_ref,
      (w_i, b_i) for each hidden layer,
      w_mu, b_mu, w_sig, b_sig,
      mu_ref, sig_ref
    """

    def kernel(*refs):
        x_ref = refs[0]
        mu_ref, sig_ref = refs[-2], refs[-1]

        h = x_ref[...]                       # already compute_dtype (cast at boundary)
        idx = 1
        for _ in range(n_hidden):
            w_ref, b_ref = refs[idx], refs[idx + 1]
            idx += 2
            # bf16/f32 MXU matmul with f32 accumulation; bias add + tanh in f32.
            a = jnp.dot(h, w_ref[...], preferred_element_type=jnp.float32)
            h = jnp.tanh(a + b_ref[...])
            # Cast activations back to the compute dtype for the next matmul
            # (no-op when compute_dtype == f32).
            h = h.astype(compute_dtype)

        w_mu_ref, b_mu_ref, w_sig_ref, b_sig_ref = (
            refs[idx], refs[idx + 1], refs[idx + 2], refs[idx + 3])

        # Two small matmuls instead of one + an unaligned column split: each
        # result tile is lane-contiguous and stored directly to its output ref.
        mu = jnp.dot(h, w_mu_ref[...], preferred_element_type=jnp.float32)
        mu = mu + b_mu_ref[...]
        logsig = jnp.dot(h, w_sig_ref[...], preferred_element_type=jnp.float32)
        logsig = logsig + b_sig_ref[...]

        mu_ref[...] = mu.astype(mu_ref.dtype)
        sig_ref[...] = jnp.exp(logsig).astype(sig_ref.dtype)

    return kernel


def mlp_normal_forward(x, params, out_dim, *, block_batch=256,
                       compute_dtype=jnp.float32):
    """Forward pass of MLP_Normal.

    params = (w1, b1, ..., wL, bL); weights stored as [in_dim, out_dim]
    (transpose of PyTorch nn.Linear layout), last layer has 2*out_dim units.
    Returns (mu, sig), each [batch, out_dim] float32.
    """
    assert len(params) % 2 == 0
    n_layers = len(params) // 2
    n_hidden = n_layers - 1

    w_last, b_last = params[-2], params[-1]
    assert w_last.shape[-1] == 2 * out_dim

    # Split the last layer so the kernel writes mu / logsigma without slicing
    # the 2*out_dim result at a non-tile boundary.
    w_mu = w_last[:, :out_dim]
    w_sig = w_last[:, out_dim:]
    b_mu = b_last[:, :out_dim]
    b_sig = b_last[:, out_dim:]

    # Cast matmul inputs to the compute dtype (bf16 on v6e/v7x halves HBM
    # traffic / VMEM for streamed x tiles); biases stay f32.
    cast = lambda a: a.astype(compute_dtype)
    x_c = cast(x)
    hidden_ops = []
    for li in range(n_hidden):
        hidden_ops.extend([cast(params[2 * li]), params[2 * li + 1]])
    last_ops = [cast(w_mu), b_mu, cast(w_sig), b_sig]

    B, in_dim = x.shape

    # Batch tile: multiple of 8 (f32 sublane); cap by block_batch. Pad batch
    # up so the grid divides evenly; padded rows are sliced off at the end.
    b_pad8 = 8 * pl.cdiv(B, 8)
    tb = min(block_batch, b_pad8)
    tb = max(8, (tb // 8) * 8)
    b_padded = tb * pl.cdiv(b_pad8, tb)
    if b_padded != B:
        x_c = jnp.pad(x_c, ((0, b_padded - B), (0, 0)))
    grid = (b_padded // tb,)

    # Specs: x / outputs tiled over the batch grid axis; weights & biases use a
    # constant index_map so they stay VMEM-resident across grid steps.
    x_spec = pl.BlockSpec((tb, in_dim), lambda i: (i, 0))
    resident = lambda a: pl.BlockSpec(a.shape, lambda i: (0,) * a.ndim)
    out_spec = pl.BlockSpec((tb, out_dim), lambda i: (i, 0))

    operands = [x_c] + hidden_ops + last_ops
    in_specs = [x_spec] + [resident(a) for a in operands[1:]]

    kernel = _make_mlp_normal_kernel(n_hidden, compute_dtype)

    mu, sig = pl.pallas_call(
        kernel,
        out_shape=(
            jax.ShapeDtypeStruct((b_padded, out_dim), jnp.float32),
            jax.ShapeDtypeStruct((b_padded, out_dim), jnp.float32),
        ),
        grid_spec=pltpu.PrefetchScalarGridSpec(
            num_scalar_prefetch=0,
            grid=grid,
            in_specs=in_specs,
            out_specs=[out_spec, out_spec],
        ),
        compiler_params=pltpu.CompilerParams(
            dimension_semantics=("parallel",),   # megacore-shard batch on v7x
        ),
    )(*operands)

    if b_padded != B:
        mu = mu[:B]
        sig = sig[:B]
    return mu, sig


def init_params(key, net_dims):
    """Deterministic init mimicking nn.Linear's U(-1/sqrt(fan_in), 1/sqrt(fan_in)).

    Weights stored as [in_dim, out_dim]; last layer has net_dims[-1]*2 units.
    """
    dims = list(net_dims[:-1]) + [net_dims[-1] * 2]
    params = []
    for in_dim, out_dim in zip(dims[:-1], dims[1:]):
        key, kw, kb = jax.random.split(key, 3)
        bound = 1.0 / jnp.sqrt(jnp.float32(in_dim))
        w = jax.random.uniform(kw, (in_dim, out_dim), jnp.float32,
                               minval=-bound, maxval=bound)
        b = jax.random.uniform(kb, (1, out_dim), jnp.float32,
                               minval=-bound, maxval=bound)
        params.extend([w, b])
    return tuple(params)


def reference_forward(x, params, out_dim):
    """Plain-JAX reference for correctness checking."""
    n_layers = len(params) // 2
    h = x
    for li in range(n_layers - 1):
        h = jnp.tanh(h @ params[2 * li] + params[2 * li + 1])
    o = h @ params[-2] + params[-1]
    return o[:, :out_dim], jnp.exp(o[:, out_dim:])


if __name__ == "__main__":
    # net_dims = [input_dim, hidden1, hidden2, output_dim]
    net_dims = [16, 32, 32, 8]
    batch = 8
    out_dim = net_dims[-1]

    key = jax.random.PRNGKey(0)
    key_x, key_p = jax.random.split(key)
    x = jax.random.normal(key_x, (batch, net_dims[0]), jnp.float32)
    params = init_params(key_p, net_dims)

    # f32 path (default): strict check against the plain-JAX reference.
    fwd = jax.jit(functools.partial(mlp_normal_forward, params=params,
                                    out_dim=out_dim))
    mu, sig = fwd(x)
    jax.block_until_ready((mu, sig))

    mu_ref, sig_ref = reference_forward(x, params, out_dim)
    assert mu.shape == (batch, out_dim) and sig.shape == (batch, out_dim)
    assert jnp.allclose(mu, mu_ref, atol=1e-5, rtol=1e-5)
    assert jnp.allclose(sig, sig_ref, atol=1e-5, rtol=1e-5)
    assert bool(jnp.all(sig > 0))

    # bf16 matmul path (v6e/v7x MXU-native); loose tolerance, smoke test only.
    fwd_bf16 = jax.jit(functools.partial(mlp_normal_forward, params=params,
                                         out_dim=out_dim,
                                         compute_dtype=jnp.bfloat16))
    mu_b, sig_b = fwd_bf16(x)
    jax.block_until_ready((mu_b, sig_b))
    assert mu_b.shape == (batch, out_dim) and sig_b.shape == (batch, out_dim)
    assert bool(jnp.all(jnp.isfinite(mu_b))) and bool(jnp.all(sig_b > 0))
    assert jnp.allclose(mu_b, mu_ref, atol=1e-1, rtol=1e-1)

    print("KERNEL_OK")
</pallas_src>

<mosaic_0001>
module attributes {stable_mosaic.version = 11 : i64} {
  func.func @kernel(%arg0: i32, %arg1: memref<8x16xf32, #tpu.memory_space<vmem>>, %arg2: memref<16x32xf32, #tpu.memory_space<vmem>>, %arg3: memref<1x32xf32, #tpu.memory_space<vmem>>, %arg4: memref<32x32xf32, #tpu.memory_space<vmem>>, %arg5: memref<1x32xf32, #tpu.memory_space<vmem>>, %arg6: memref<32x8xf32, #tpu.memory_space<vmem>>, %arg7: memref<1x8xf32, #tpu.memory_space<vmem>>, %arg8: memref<32x8xf32, #tpu.memory_space<vmem>>, %arg9: memref<1x8xf32, #tpu.memory_space<vmem>>, %arg10: memref<8x8xf32, #tpu.memory_space<vmem>>, %arg11: memref<8x8xf32, #tpu.memory_space<vmem>>) attributes {dimension_semantics = [#tpu.dimension_semantics<parallel>], iteration_bounds = array<i64: 1>, scalar_prefetch = 0 : i64, scratch_operands = 0 : i64, tpu.core_type = #tpu.core_type<tc>, window_params = [{transform_indices = @transform_0, window_bounds = array<i64: 8, 16>}, {pipeline_mode = #tpu.pipeline_mode<synchronous>, transform_indices = @transform_1, window_bounds = array<i64: 16, 32>}, {pipeline_mode = #tpu.pipeline_mode<synchronous>, transform_indices = @transform_2, window_bounds = array<i64: 1, 32>}, {pipeline_mode = #tpu.pipeline_mode<synchronous>, transform_indices = @transform_3, window_bounds = array<i64: 32, 32>}, {pipeline_mode = #tpu.pipeline_mode<synchronous>, transform_indices = @transform_4, window_bounds = array<i64: 1, 32>}, {pipeline_mode = #tpu.pipeline_mode<synchronous>, transform_indices = @transform_5, window_bounds = array<i64: 32, 8>}, {pipeline_mode = #tpu.pipeline_mode<synchronous>, transform_indices = @transform_6, window_bounds = array<i64: 1, 8>}, {pipeline_mode = #tpu.pipeline_mode<synchronous>, transform_indices = @transform_7, window_bounds = array<i64: 32, 8>}, {pipeline_mode = #tpu.pipeline_mode<synchronous>, transform_indices = @transform_8, window_bounds = array<i64: 1, 8>}, {transform_indices = @transform_9, window_bounds = array<i64: 8, 8>}, {transform_indices = @transform_10, window_bounds = array<i64: 8, 8>}]} {
    %c0 = arith.constant 0 : index
    %c0_0 = arith.constant 0 : index
    %0 = vector.load %arg1[%c0, %c0_0] : memref<8x16xf32, #tpu.memory_space<vmem>>, vector<8x16xf32>
    %c0_1 = arith.constant 0 : index
    %c0_2 = arith.constant 0 : index
    %1 = vector.load %arg2[%c0_1, %c0_2] : memref<16x32xf32, #tpu.memory_space<vmem>>, vector<16x32xf32>
    %cst = arith.constant dense<0.000000e+00> : vector<8x32xf32>
    %2 = tpu.matmul %0, %1, %cst {dimension_numbers = #tpu.dot_dimension_numbers<[1], [0], [0], [1], [0, 0, 1, 1], [], []>} : vector<8x16xf32>, vector<16x32xf32>, vector<8x32xf32> -> vector<8x32xf32>
    %c0_3 = arith.constant 0 : index
    %c0_4 = arith.constant 0 : index
    %3 = vector.load %arg3[%c0_3, %c0_4] : memref<1x32xf32, #tpu.memory_space<vmem>>, vector<1x32xf32>
    %4 = vector.broadcast %3 : vector<1x32xf32> to vector<8x32xf32>
    %5 = arith.addf %2, %4 : vector<8x32xf32>
    %6 = math.tanh %5 : vector<8x32xf32>
    %c0_5 = arith.constant 0 : index
    %c0_6 = arith.constant 0 : index
    %7 = vector.load %arg4[%c0_5, %c0_6] : memref<32x32xf32, #tpu.memory_space<vmem>>, vector<32x32xf32>
    %cst_7 = arith.constant dense<0.000000e+00> : vector<8x32xf32>
    %8 = tpu.matmul %6, %7, %cst_7 {dimension_numbers = #tpu.dot_dimension_numbers<[1], [0], [0], [1], [0, 0, 1, 1], [], []>} : vector<8x32xf32>, vector<32x32xf32>, vector<8x32xf32> -> vector<8x32xf32>
    %c0_8 = arith.constant 0 : index
    %c0_9 = arith.constant 0 : index
    %9 = vector.load %arg5[%c0_8, %c0_9] : memref<1x32xf32, #tpu.memory_space<vmem>>, vector<1x32xf32>
    %10 = vector.broadcast %9 : vector<1x32xf32> to vector<8x32xf32>
    %11 = arith.addf %8, %10 : vector<8x32xf32>
    %12 = math.tanh %11 : vector<8x32xf32>
    %c0_10 = arith.constant 0 : index
    %c0_11 = arith.constant 0 : index
    %13 = vector.load %arg6[%c0_10, %c0_11] : memref<32x8xf32, #tpu.memory_space<vmem>>, vector<32x8xf32>
    %cst_12 = arith.constant dense<0.000000e+00> : vector<8x8xf32>
    %14 = tpu.matmul %12, %13, %cst_12 {dimension_numbers = #tpu.dot_dimension_numbers<[1], [0], [0], [1], [0, 0, 1, 1], [], []>} : vector<8x32xf32>, vector<32x8xf32>, vector<8x8xf32> -> vector<8x8xf32>
    %c0_13 = arith.constant 0 : index
    %c0_14 = arith.constant 0 : index
    %15 = vector.load %arg7[%c0_13, %c0_14] : memref<1x8xf32, #tpu.memory_space<vmem>>, vector<1x8xf32>
    %16 = vector.broadcast %15 : vector<1x8xf32> to vector<8x8xf32>
    %17 = arith.addf %14, %16 : vector<8x8xf32>
    %c0_15 = arith.constant 0 : index
    %c0_16 = arith.constant 0 : index
    %18 = vector.load %arg8[%c0_15, %c0_16] : memref<32x8xf32, #tpu.memory_space<vmem>>, vector<32x8xf32>
    %cst_17 = arith.constant dense<0.000000e+00> : vector<8x8xf32>
    %19 = tpu.matmul %12, %18, %cst_17 {dimension_numbers = #tpu.dot_dimension_numbers<[1], [0], [0], [1], [0, 0, 1, 1], [], []>} : vector<8x32xf32>, vector<32x8xf32>, vector<8x8xf32> -> vector<8x8xf32>
    %c0_18 = arith.constant 0 : index
    %c0_19 = arith.constant 0 : index
    %20 = vector.load %arg9[%c0_18, %c0_19] : memref<1x8xf32, #tpu.memory_space<vmem>>, vector<1x8xf32>
    %21 = vector.broadcast %20 : vector<1x8xf32> to vector<8x8xf32>
    %22 = arith.addf %19, %21 : vector<8x8xf32>
    %c0_20 = arith.constant 0 : index
    %c0_21 = arith.constant 0 : index
    %23 = vector.load %arg10[%c0_20, %c0_21] : memref<8x8xf32, #tpu.memory_space<vmem>>, vector<8x8xf32>
    tpu.vector_store %arg10[%c0_20, %c0_21], %17 {strides = array<i32>} : memref<8x8xf32, #tpu.memory_space<vmem>>, vector<8x8xf32>,
    %24 = math.exp %22 : vector<8x8xf32>
    %c0_22 = arith.constant 0 : index
    %c0_23 = arith.constant 0 : index
    %25 = vector.load %arg11[%c0_22, %c0_23] : memref<8x8xf32, #tpu.memory_space<vmem>>, vector<8x8xf32>
    tpu.vector_store %arg11[%c0_22, %c0_23], %24 {strides = array<i32>} : memref<8x8xf32, #tpu.memory_space<vmem>>, vector<8x8xf32>,
    return
  }
  func.func @transform_0(%arg0: i32) -> (i32, i32) {
    %c0_i32 = arith.constant 0 : i32
    %c0_i32_0 = arith.constant 0 : i32
    return %arg0, %c0_i32 : i32, i32
  }
  func.func @transform_1(%arg0: i32) -> (i32, i32) {
    %c0_i32 = arith.constant 0 : i32
    %c0_i32_0 = arith.constant 0 : i32
    %c0_i32_1 = arith.constant 0 : i32
    return %c0_i32, %c0_i32_0 : i32, i32
  }
  func.func @transform_2(%arg0: i32) -> (i32, i32) {
    %c0_i32 = arith.constant 0 : i32
    %c0_i32_0 = arith.constant 0 : i32
    %c0_i32_1 = arith.constant 0 : i32
    return %c0_i32, %c0_i32_0 : i32, i32
  }
  func.func @transform_3(%arg0: i32) -> (i32, i32) {
    %c0_i32 = arith.constant 0 : i32
    %c0_i32_0 = arith.constant 0 : i32
    %c0_i32_1 = arith.constant 0 : i32
    return %c0_i32, %c0_i32_0 : i32, i32
  }
  func.func @transform_4(%arg0: i32) -> (i32, i32) {
    %c0_i32 = arith.constant 0 : i32
    %c0_i32_0 = arith.constant 0 : i32
    %c0_i32_1 = arith.constant 0 : i32
    return %c0_i32, %c0_i32_0 : i32, i32
  }
  func.func @transform_5(%arg0: i32) -> (i32, i32) {
    %c0_i32 = arith.constant 0 : i32
    %c0_i32_0 = arith.constant 0 : i32
    %c0_i32_1 = arith.constant 0 : i32
    return %c0_i32, %c0_i32_0 : i32, i32
  }
  func.func @transform_6(%arg0: i32) -> (i32, i32) {
    %c0_i32 = arith.constant 0 : i32
    %c0_i32_0 = arith.constant 0 : i32
    %c0_i32_1 = arith.constant 0 : i32
    return %c0_i32, %c0_i32_0 : i32, i32
  }
  func.func @transform_7(%arg0: i32) -> (i32, i32) {
    %c0_i32 = arith.constant 0 : i32
    %c0_i32_0 = arith.constant 0 : i32
    %c0_i32_1 = arith.constant 0 : i32
    return %c0_i32, %c0_i32_0 : i32, i32
  }
  func.func @transform_8(%arg0: i32) -> (i32, i32) {
    %c0_i32 = arith.constant 0 : i32
    %c0_i32_0 = arith.constant 0 : i32
    %c0_i32_1 = arith.constant 0 : i32
    return %c0_i32, %c0_i32_0 : i32, i32
  }
  func.func @transform_9(%arg0: i32) -> (i32, i32) {
    %c0_i32 = arith.constant 0 : i32
    %c0_i32_0 = arith.constant 0 : i32
    return %arg0, %c0_i32 : i32, i32
  }
  func.func @transform_10(%arg0: i32) -> (i32, i32) {
    %c0_i32 = arith.constant 0 : i32
    %c0_i32_0 = arith.constant 0 : i32
    return %arg0, %c0_i32 : i32, i32
  }
}

</mosaic_0001>

<bundles_post_ra>
// kernel: mlp_normal_forward.1
= control target key start
LH: loop header
LB: loop body
LE: loop exit
PB: predicated region body
PF: predicated region fallthrough
CT: control target
= control target key end

     0   :  { %16 = vsyncpa [#allocation3], 0  ;;  %s927_s0 = inlined_call_operand.hbm [shape: f32[8,16], index: 0, kind: input, shape index: {}]   ;;  %s928_s1 = inlined_call_operand.hbm [shape: f32[16,32], index: 1, kind: input, shape index: {}]   ;;  %s929_s2 = inlined_call_operand.vmem [shape: f32[1,32], index: 2, kind: input, shape index: {}]   ;;  %s930_s3 = inlined_call_operand.hbm [shape: f32[32,32], index: 3, kind: input, shape index: {}]   ;;  %s931_s4 = inlined_call_operand.vmem [shape: f32[1,32], index: 4, kind: input, shape index: {}]   ;;  %s932_s5 = inlined_call_operand.hbm [shape: f32[32,8], index: 5, kind: input, shape index: {}]   ;;  %s933_s6 = inlined_call_operand.vmem [shape: f32[1,8], index: 6, kind: input, shape index: {}]   ;;  %s934_s7 = inlined_call_operand.hbm [shape: f32[32,8], index: 7, kind: input, shape index: {}]   ;;  %s935_s8 = inlined_call_operand.vmem [shape: f32[1,8], index: 8, kind: input, shape index: {}]   ;;  %s936_s9 = inlined_call_operand.hbm [shape: f32[8,8], index: 9, kind: output, shape index: {0}]   ;;  %s937_s10 = inlined_call_operand.hbm [shape: f32[8,8], index: 10, kind: output, shape index: {1}]  }
   0x1   :  { %17 = vsyncpa [#allocation6], 0 }
   0x2   :  { %18 = vsyncpa [#allocation9], 0 }
   0x3   :  { %19 = vsyncpa [#allocation4], 0 }
   0x4   :  { %20 = vsyncpa [#allocation13], 0  ;;  %s743_s13 = smov [#allocation5]   ;;  %s579_s17 = scalar_lea.hbm %s928_s1, 256 }
   0x5   :  { %s36_s14 = sshll.u32 %s743_s13, 4  ;;  %p580_p0 = scmp.ne.s32.totalorder %s928_s1, %s579_s17  ;;  %s37_s14 = int_to_ptr.vmem [resolvable:$true] %s36_s14 }
   0x6   :  { %p583_p1 = scmp.lt.u32.totalorder %s579_s17, %s928_s1 }
   0x8   :  { %p585_p2 = pnand %p583_p1, %p580_p0 }
   0xa   :  { %588 = shalt.err (!%p585_p2)
}
   0xb   :  { %s589_s22 = scalar_lea.vmem %s37_s14, 256  ;;  %p594_p4 = scmp.lt.s32.totalorder %s37_s14, %s37_s14 }
   0xc   :  { %p590_p3 = scmp.ne.s32.totalorder %s37_s14, %s589_s22  ;;  %p595_p5 = scmp.lt.s32.totalorder %s589_s22, %s589_s22 }
   0xe   :  { %p596_p6 = por %p595_p5, %p594_p4 }
  0x10   :  { %p597_p7 = pnand %p596_p6, %p590_p3 }
  0x12   :  { %600 = shalt.err (!%p597_p7)
}
  0x13   :  { %s744_s23 = smov 128   ;;  %s745_s24 = smov 8  }
  0x14   :  { %42 = dma.hbm_to_vmem [thread:$0]  %s928_s1, 256, %s37_s14, [#allocation6], %s744_s23, %s744_s23, %s745_s24  }
  0x15   :  { %s746_s27 = smov [#allocation8]   ;;  %s747_s29 = smov [#allocation2]  }
  0x16   :  { %s64_s28 = sshll.u32 %s746_s27, 4  ;;  %s27_s30 = sshll.u32 %s747_s29, 4  ;;  %s65_s28 = int_to_ptr.vmem [resolvable:$true] %s64_s28  ;;  %s28_s30 = int_to_ptr.vmem [resolvable:$true] %s27_s30 }
  0x17   :  { %s601_s13 = scalar_lea.hbm %s932_s5, 512 }
  0x18   :  { %p602_p8 = scmp.ne.s32.totalorder %s932_s5, %s601_s13  ;;  %p605_p9 = scmp.lt.u32.totalorder %s601_s13, %s932_s5 }
  0x1a   :  { %p607_p10 = pnand %p605_p9, %p602_p8 }
  0x1c   :  { %610 = shalt.err (!%p607_p10)
}
  0x1d   :  { %s611_s1 = scalar_lea.vmem %s65_s28, 512  ;;  %p616_p12 = scmp.lt.s32.totalorder %s65_s28, %s65_s28 }
  0x1e   :  { %p612_p11 = scmp.ne.s32.totalorder %s65_s28, %s611_s1  ;;  %p617_p13 = scmp.lt.s32.totalorder %s611_s1, %s611_s1 }
  0x20   :  { %p618_p0 = por %p617_p13, %p616_p12 }
  0x22   :  { %p619_p1 = pnand %p618_p0, %p612_p11 }
  0x24   :  { %622 = shalt.err (!%p619_p1)
}
  0x25   :  { %70 = dma.hbm_to_vmem [thread:$0]  %s932_s5, 512, %s65_s28, [#allocation9], %s744_s23, %s744_s23, %s745_s24  }
  0x26   :  { %s623_s22 = scalar_lea.hbm %s927_s0, 128 }
  0x27   :  { %p624_p2 = scmp.ne.s32.totalorder %s927_s0, %s623_s22  ;;  %p627_p3 = scmp.lt.u32.totalorder %s623_s22, %s927_s0 }
  0x29   :  { %p629_p4 = pnand %p627_p3, %p624_p2 }
  0x2b   :  { %632 = shalt.err (!%p629_p4)
}
  0x2c   :  { %s633_s11 = scalar_lea.vmem %s28_s30, 128  ;;  %p638_p6 = scmp.lt.s32.totalorder %s28_s30, %s28_s30 }
  0x2d   :  { %p634_p5 = scmp.ne.s32.totalorder %s28_s30, %s633_s11  ;;  %p639_p7 = scmp.lt.s32.totalorder %s633_s11, %s633_s11 }
  0x2f   :  { %p640_p8 = por %p639_p7, %p638_p6 }
  0x31   :  { %p641_p9 = pnand %p640_p8, %p634_p5 }
  0x33   :  { %644 = shalt.err (!%p641_p9)
}
  0x34   :  { %30 = dma.hbm_to_vmem [thread:$0]  %s927_s0, 128, %s28_s30, [#allocation3]  }
  0x35   :  { %s748_s12 = smov [#allocation7]   ;;  %s749_s15 = smov [#allocation10]  }
  0x36   :  { %s50_s13 = sshll.u32 %s748_s12, 4  ;;  %s78_s16 = sshll.u32 %s749_s15, 4  ;;  %s51_s13 = int_to_ptr.vmem [resolvable:$true] %s50_s13  ;;  %s79_s16 = int_to_ptr.vmem [resolvable:$true] %s78_s16 }
  0x37   :  { %s645_s1 = scalar_lea.hbm %s930_s3, 512 }
  0x38   :  { %p646_p10 = scmp.ne.s32.totalorder %s930_s3, %s645_s1  ;;  %p649_p11 = scmp.lt.u32.totalorder %s645_s1, %s930_s3 }
  0x3a   :  { %p651_p12 = pnand %p649_p11, %p646_p10 }
  0x3c   :  { %654 = shalt.err (!%p651_p12)
}
  0x3d   :  { %s655_s0 = scalar_lea.vmem %s51_s13, 512  ;;  %p660_p0 = scmp.lt.s32.totalorder %s51_s13, %s51_s13 }
  0x3e   :  { %p656_p13 = scmp.ne.s32.totalorder %s51_s13, %s655_s0  ;;  %p661_p1 = scmp.lt.s32.totalorder %s655_s0, %s655_s0 }
  0x40   :  { %p662_p2 = por %p661_p1, %p660_p0 }
  0x42   :  { %p663_p3 = pnand %p662_p2, %p656_p13 }
  0x44   :  { %666 = shalt.err (!%p663_p3)
}
  0x45   :  { %56 = dma.hbm_to_vmem [thread:$0]  %s930_s3, 512, %s51_s13, [#allocation6], %s744_s23, %s744_s23, %s745_s24  }
  0x46   :  { %s667_s27 = scalar_lea.hbm %s934_s7, 512 }
  0x47   :  { %p668_p4 = scmp.ne.s32.totalorder %s934_s7, %s667_s27  ;;  %p671_p5 = scmp.lt.u32.totalorder %s667_s27, %s934_s7 }
  0x49   :  { %p673_p6 = pnand %p671_p5, %p668_p4 }
  0x4b   :  { %676 = shalt.err (!%p673_p6)
}
  0x4c   :  { %s677_s12 = scalar_lea.vmem %s79_s16, 512  ;;  %p682_p8 = scmp.lt.s32.totalorder %s79_s16, %s79_s16 }
  0x4d   :  { %p678_p7 = scmp.ne.s32.totalorder %s79_s16, %s677_s12  ;;  %p683_p9 = scmp.lt.s32.totalorder %s677_s12, %s677_s12 }
  0x4f   :  { %p684_p10 = por %p683_p9, %p682_p8 }
  0x51   :  { %p685_p11 = pnand %p684_p10, %p678_p7 }
  0x53   :  { %688 = shalt.err (!%p685_p11)
}
  0x54   :  { %84 = dma.hbm_to_vmem [thread:$0]  %s934_s7, 512, %s79_s16, [#allocation9], %s744_s23, %s744_s23, %s745_s24  }
  0x55   :  { %733 = dma.done.wait [#allocation3], 128  }
  0x56   :  { %734 = vsyncadd [#allocation3], 4294967168 }
  0x57   :  { %735 = dma.done.wait [#allocation6], 768  }
  0x58   :  { %736 = vsyncadd [#allocation6], 4294966528 }
  0x59   :  { %737 = dma.done.wait [#allocation9], 1024  }
  0x5a   :  { %738 = vsyncadd [#allocation9], 4294966272  ;;  %v750_v0 = vmov 0.0|0.0   ;;  %vm751_vm0 = vmmov 0   ;;  %v752_v1 = vmov 0.0   ;;  %v103_v2 = vld [vmem:[#allocation5] sm:$0xff] }
  0x5b   :  { %540 = vmatprep.subr.bf16.mxu0 %v750_v0  ;;  %504 = vmatprep.mubr.msk.f32.mxu0 %vm751_vm0, %v752_v1  ;;  %v104_v3 = vld [vmem:[#allocation5 + $0x8] sm:$0xff]  ;;  %v102_v5 = vld [vmem:[#allocation2] sm:$0xff]  ;;  %vm112_vm1 = vcmask 130048   ;;  %v187_v6 = vld [vmem:[#allocation7] sm:$0xff]  ;;  %vm198_vm2 = vcmask 261120   ;;  %s753_s1 = smov [#allocation11]  }
  0x5c   :  { %543 = vmatprep.subr.bf16.mxu1 %v750_v0  ;;  %515 = vmatprep.mubr.msk.f32.mxu1 %vm751_vm0, %v752_v1  ;;  %v541_v4 = vpack.c.bf16 %v104_v3, %v103_v2  ;;  %v188_v7 = vld [vmem:[#allocation7 + $0x8] sm:$0xff]  ;;  %v189_v8 = vld [vmem:[#allocation7 + $0x10] sm:$0xff]  ;;  %v190_v10 = vld [vmem:[#allocation7 + $0x18] sm:$0xff]  ;;  %s449_s14 = sshll.u32 %s753_s1, 4  ;;  %vm438_vm3 = vcmask 64512   ;;  %s450_s14 = int_to_ptr.vmem [resolvable:$true] %s449_s14 }
  0x5d   :  { %v544_v9 = vpack.c.bf16 %v188_v7, %v187_v6  ;;  %v547_v11 = vpack.c.bf16 %v190_v10, %v189_v8  ;;  %v474_v12 = vld [vmem:[%s929_s2] ss:$0 sm:$0xff]  ;;  %v273_v17 = vld [vmem:[#allocation8] sm:$0xff]  ;;  %v275_v22 = vld [vmem:[#allocation8 + $0x10] sm:$0xff]  ;;  %p694_p13 = scmp.lt.s32.totalorder %s450_s14, %s450_s14 }
  0x5e   :  { %542 = vmatpush3.bf16.msra.mxu0 %v541_v4  ;;  %v274_v18 = vld [vmem:[#allocation8 + $0x8] sm:$0xff]  ;;  %v357_v19 = vld [vmem:[#allocation10] sm:$0xff]  ;;  %v276_v23 = vld [vmem:[#allocation8 + $0x18] sm:$0xff] }
  0x5f   :  { %549 = vmatprep.subr.bf16.mxu0 %v750_v0  ;;  %545 = vmatpush3.bf16.msra.mxu1 %v544_v9  ;;  %v550_v20 = vpack.c.bf16 %v274_v18, %v273_v17  ;;  %v358_v21 = vld [vmem:[#allocation10 + $0x8] sm:$0xff]  ;;  %v359_v25 = vld [vmem:[#allocation10 + $0x10] sm:$0xff]  ;;  %v360_v26 = vld [vmem:[#allocation10 + $0x18] sm:$0xff]  ;;  %v553_v27 = vpack.c.bf16 %v276_v23, %v275_v22 }
  0x60   :  { %546 = vmatprep.subr.bf16.mxu1 %v750_v0  ;;  %v556_v24 = vpack.c.bf16 %v358_v21, %v357_v19  ;;  %v559_v28 = vpack.c.bf16 %v360_v26, %v359_v25  ;;  %v476_v29 = vld [vmem:[%s931_s4] ss:$0 sm:$0xff]  ;;  %s689_s4 = scalar_lea.vmem %s450_s14, 128 }
  0x61   :  { %505 = vmatmul.mubr.msk.f32.vlgmr.msra.gmra.mrb[0].mxu0 %vm112_vm1, %v102_v5  ;;  %v478_v34 = vld [vmem:[%s933_s6] ss:$0 sm:$0xff]  ;;  %p690_p12 = scmp.ne.s32.totalorder %s450_s14, %s689_s4  ;;  %p695_p0 = scmp.lt.s32.totalorder %s689_s4, %s689_s4 }
  0x62   :  { %526 = vmatprep.mubr.msk.f32.mxu0 %vm751_vm0, %v752_v1  ;;  %551 = vmatpush3.bf16.msra.mxu0 %v550_v20  ;;  %v480_v35 = vld [vmem:[%s935_s8] ss:$0 sm:$0xff] }
  0x63   :  { %548 = vmatpush3.bf16.msra.mxu1 %v547_v11  ;;  %552 = vmatprep.subr.bf16.mxu0 %v750_v0  ;;  %p696_p1 = por %p695_p0, %p694_p13 }
  0x64   :  { %555 = vmatprep.subr.bf16.mxu1 %v750_v0 }
  0x65   :  { %p697_p2 = pnand %p696_p1, %p690_p12 }
  0x66   :  { %554 = vmatpush3.bf16.msra.mxu0 %v553_v27 }
 0x134   :  { %v182_v13 = vpop.f32.mrb[0].mxu0 }
 0x135   :  { %v183_v14 = vadd.f32 %v474_v12, %v182_v13  ;;  %v506_v15 = vpop.f32.mrb[1].mxu0 }
 0x137   :  { %573 = vtanh.f32 %v183_v14 }
 0x141   :  { %v574_v16 = vpop.eup %573 }
 0x142   :  { %516 = vmatmul.mubr.msk.f32.vlgmr.msra.gmra.mrb[0].mxu1 %vm198_vm2, %v574_v16 }
 0x143   :  { %537 = vmatprep.mubr.msk.f32.mxu1 %vm751_vm0, %v752_v1  ;;  %557 = vmatpush3.bf16.msra.mxu1 %v556_v24 }
 0x144   :  { %558 = vmatprep.subr.bf16.mxu1 %v750_v0 }
 0x147   :  { %560 = vmatpush3.bf16.msra.mxu1 %v559_v28 }
 0x215   :  { %v268_v30 = vpop.f32.mrb[0].mxu1 }
 0x216   :  { %v269_v31 = vadd.f32 %v476_v29, %v268_v30  ;;  %v517_v32 = vpop.f32.mrb[1].mxu1 }
 0x218   :  { %575 = vtanh.f32 %v269_v31 }
 0x222   :  { %v576_v33 = vpop.eup %575 }
 0x223   :  { %527 = vmatmul.mubr.msk.f32.vlgmr.msra.gmra.mrb[2].mxu0 %vm198_vm2, %v576_v33  ;;  %538 = vmatmul.mubr.msk.f32.vlgmr.msra.gmra.mrb[2].mxu1 %vm198_vm2, %v576_v33 }
 0x2f6   :  { %v353_v36 = vpop.f32.mrb[2].mxu0  ;;  %v434_v37 = vpop.f32.mrb[2].mxu1 }
 0x2f7   :  { %v354_v38 = vadd.f32 %v478_v34, %v353_v36  ;;  %v435_v39 = vadd.f32 %v480_v35, %v434_v37  ;;  %v528_v40 = vpop.f32.mrb[3].mxu0  ;;  %v539_v41 = vpop.f32.mrb[3].mxu1 }
 0x2f9   :  { %v440_v42 = vmul.f32 1.442695, %v435_v39  ;;  %439 = vst.msk [vmem:[#allocation11] sm:$0xff] %vm438_vm3, %v354_v38 }
 0x2fa   :  { %700 = shalt.err (!%p697_p2)
}
 0x2fb   :  { %s701_s19 = scalar_lea.hbm %s936_s9, 128 }
 0x2fc   :  { %p702_p3 = scmp.ne.s32.totalorder %s936_s9, %s701_s19  ;;  %p705_p4 = scmp.lt.u32.totalorder %s701_s19, %s936_s9 }
 0x2fe   :  { %p707_p5 = pnand %p705_p4, %p702_p3 }
 0x300   :  { %710 = shalt.err (!%p707_p5)
}
 0x301   :  { %452 = dma.vmem_to_hbm [thread:$0]  %s450_s14, 128, %s936_s9, [#allocation4]   ;;  %577 = vpow2.f32 %v440_v42 }
 0x302   :  { %s754_s26 = smov [#allocation12]  }
 0x303   :  { %s459_s27 = sshll.u32 %s754_s26, 4  ;;  %s460_s27 = int_to_ptr.vmem [resolvable:$true] %s459_s27 }
 0x304   :  { %s711_s29 = scalar_lea.vmem %s460_s27, 128  ;;  %p716_p7 = scmp.lt.s32.totalorder %s460_s27, %s460_s27 }
 0x305   :  { %p712_p6 = scmp.ne.s32.totalorder %s460_s27, %s711_s29  ;;  %p717_p8 = scmp.lt.s32.totalorder %s711_s29, %s711_s29 }
 0x307   :  { %p718_p9 = por %p717_p8, %p716_p7 }
 0x309   :  { %p719_p10 = pnand %p718_p9, %p712_p6 }
 0x30b   :  { %v578_v43 = vpop.eup %577 }
 0x30c   :  { %442 = vst.msk [vmem:[#allocation12] sm:$0xff] %vm438_vm3, %v578_v43 }
 0x30d   :  { %722 = shalt.err (!%p719_p10)
}
 0x30e   :  { %s723_s28 = scalar_lea.hbm %s937_s10, 128 }
 0x30f   :  { %p724_p11 = scmp.ne.s32.totalorder %s937_s10, %s723_s28  ;;  %p727_p12 = scmp.lt.u32.totalorder %s723_s28, %s937_s10 }
 0x311   :  { %p729_p13 = pnand %p727_p12, %p724_p11 }
 0x313   :  { %732 = shalt.err (!%p729_p13)
}
 0x314   :  { %462 = dma.vmem_to_hbm [thread:$0]  %s460_s27, 128, %s937_s10, [#allocation13]  }
 0x315   :  { %739 = dma.done.wait [#allocation4], 128  }
 0x316   :  { %740 = vsyncadd [#allocation4], 4294967168 }
 0x317   :  { %741 = dma.done.wait [#allocation13], 128  }
 0x318   :  { %742 = vsyncadd [#allocation13], 4294967168 }
 0x319   :  { %469 = vsyncpa [#allocation3], 1 }
 0x31a   :  { %470 = vsyncpa [#allocation6], 1 }
 0x31b   :  { %471 = vsyncpa [#allocation9], 1 }
 0x31c   :  { %472 = vsyncpa [#allocation4], 1 }
 0x31d   :  { %473 = vsyncpa [#allocation13], 1 }

</bundles_post_ra>
